<compile_context>
chip_gen: v6e
topology: v6e:2x2x1
jax: 0.10.0
libtpu: 0.0.40
codegen_flags: <defaults>
</compile_context>

<pallas_src>
import jax
import jax.numpy as jnp
from jax.experimental import pallas as pl
from jax.experimental.pallas import tpu as pltpu


_LANES = 1024                                   # 8 vregs wide -> unmasked stores
_TARGET_BLOCK_BYTES = 8 * 1024 * 1024           # ~8 MiB per block
_MIN_MEGACORE_BLOCK_BYTES = 1 * 1024 * 1024     # never shrink blocks below ~1 MiB
_VMEM_LIMIT_CAP = 48 * 1024 * 1024              # safely under v7x's 64 MiB physical


def _linreg_kernel(w_ref, b_ref, x_ref, o_ref):
    # w_ref / b_ref: (1,) scalars in SMEM; x_ref / o_ref: VMEM tiles.
    w = w_ref[0]
    b = b_ref[0]
    o_ref[...] = x_ref[...] * w + b


def _num_tensorcores() -> int:
    """Best-effort chip detection: 2 TCs on v7x, 1 on v5e/v6e."""
    try:
        dev = jax.devices()[0]
        if dev.platform == "tpu" and "v7" in str(getattr(dev, "device_kind", "")).lower():
            return 2
    except Exception:
        pass
    return 1


def _linreg_slab(x2: jax.Array, weights: jax.Array, bias: jax.Array) -> jax.Array:
    """Stream a sublane-aligned (rows, _LANES) slab through the kernel."""
    rows, lanes = x2.shape
    assert lanes == _LANES
    dtype = x2.dtype
    itemsize = jnp.dtype(dtype).itemsize
    sublane = 8 * max(1, 4 // itemsize)          # f32: 8, bf16: 16, int8/fp8: 32
    bytes_per_row = _LANES * itemsize

    # ---- Byte-budgeted block size (multiple of the packed sublane tile) -----
    target_rows = max(sublane,
                      (_TARGET_BLOCK_BYTES // bytes_per_row) // sublane * sublane)
    block_rows = min(target_rows, rows)

    # ---- Megacore split: v7x only, and never below ~1 MiB per block ---------
    if _num_tensorcores() >= 2:
        min_rows = max(sublane,
                       (_MIN_MEGACORE_BLOCK_BYTES // bytes_per_row) // sublane * sublane)
        if rows >= 2 * min_rows:
            steps = 4 if rows >= 4 * min_rows else 2
            cap = max(min_rows, (rows // steps) // sublane * sublane)
            block_rows = min(block_rows, cap)

    grid = (pl.cdiv(rows, block_rows),)

    # Double-buffered in + out pipeline => ~4x block of VMEM, plus headroom.
    pipeline_bytes = 4 * block_rows * bytes_per_row
    vmem_limit = int(pipeline_bytes * 1.25) + (1 << 20)
    vmem_limit = max(16 * 1024 * 1024, min(vmem_limit, _VMEM_LIMIT_CAP))

    return pl.pallas_call(
        _linreg_kernel,
        out_shape=jax.ShapeDtypeStruct((rows, _LANES), dtype),
        grid_spec=pl.GridSpec(
            grid=grid,
            in_specs=[
                pl.BlockSpec(memory_space=pltpu.MemorySpace.SMEM),   # weights (1,)
                pl.BlockSpec(memory_space=pltpu.MemorySpace.SMEM),   # bias    (1,)
                pl.BlockSpec((block_rows, _LANES), lambda i: (i, 0)),  # x tile
            ],
            out_specs=pl.BlockSpec((block_rows, _LANES), lambda i: (i, 0)),
        ),
        compiler_params=pltpu.CompilerParams(
            dimension_semantics=("parallel",),
            vmem_limit_bytes=vmem_limit,
        ),
    )(weights, bias, x2)


def linear_regression_forward(x: jax.Array, weights: jax.Array,
                              bias: jax.Array) -> jax.Array:
    """y = weights * x + bias (scalar broadcast), any input shape/rank."""
    orig_shape = x.shape
    dtype = x.dtype
    total = int(x.size)
    itemsize = jnp.dtype(dtype).itemsize
    sublane = 8 * max(1, 4 // itemsize)
    chunk = sublane * _LANES                     # smallest fully-aligned slab

    w = weights.astype(dtype)
    b = bias.astype(dtype)

    if total == 0:
        return x

    flat = x.reshape(-1)
    main = (total // chunk) * chunk

    if main == 0:
        # Tiny input (< one chunk): not worth a kernel launch / extra HBM pass.
        return (w[0] * flat + b[0]).reshape(orig_shape)

    if main == total:
        # Aligned: exactly one HBM read + one write; no pad / slice passes.
        y2 = _linreg_slab(flat.reshape(main // _LANES, _LANES), w, b)
        return y2.reshape(orig_shape)

    # Unaligned: kernel on the aligned prefix, plain jnp on the (< chunk) tail.
    y_main = _linreg_slab(flat[:main].reshape(main // _LANES, _LANES), w, b)
    y_tail = w[0] * flat[main:] + b[0]
    return jnp.concatenate([y_main.reshape(-1), y_tail]).reshape(orig_shape)


if __name__ == "__main__":
    key = jax.random.PRNGKey(0)
    k_w, k_b, k_x1, k_x2, k_x3 = jax.random.split(key, 5)

    # Parameters matching nn.Parameter(torch.randn(1)) shapes.
    weights = jax.random.normal(k_w, (1,), dtype=jnp.float32)
    bias = jax.random.normal(k_b, (1,), dtype=jnp.float32)

    # Aligned input: flattens into exactly two (8, 1024) chunks -> pure kernel path.
    x1 = jax.random.normal(k_x1, (64, 256), dtype=jnp.float32)
    y1 = jax.block_until_ready(linear_regression_forward(x1, weights, bias))
    assert jnp.allclose(y1, weights * x1 + bias, atol=1e-6, rtol=1e-6), "mismatch (aligned)"

    # Unaligned input: kernel on the aligned prefix + jnp tail.
    x2 = jax.random.normal(k_x2, (9, 1000), dtype=jnp.float32)
    y2 = jax.block_until_ready(linear_regression_forward(x2, weights, bias))
    assert jnp.allclose(y2, weights * x2 + bias, atol=1e-6, rtol=1e-6), "mismatch (prefix+tail)"

    # Tiny input: tail-only plain-jnp path.
    x3 = jax.random.normal(k_x3, (7, 33), dtype=jnp.float32)
    y3 = jax.block_until_ready(linear_regression_forward(x3, weights, bias))
    assert jnp.allclose(y3, weights * x3 + bias, atol=1e-6, rtol=1e-6), "mismatch (tiny)"

    print("KERNEL_OK")
</pallas_src>

<mosaic_0001>
module attributes {stable_mosaic.version = 11 : i64} {
  func.func @_linreg_kernel(%arg0: i32, %arg1: memref<1xf32, #tpu.memory_space<smem>>, %arg2: memref<1xf32, #tpu.memory_space<smem>>, %arg3: memref<16x1024xf32, #tpu.memory_space<vmem>>, %arg4: memref<16x1024xf32, #tpu.memory_space<vmem>>) attributes {dimension_semantics = [#tpu.dimension_semantics<parallel>], iteration_bounds = array<i64: 1>, scalar_prefetch = 0 : i64, scratch_operands = 0 : i64, tpu.core_type = #tpu.core_type<tc>, window_params = [{transform_indices = @transform_0, window_bounds = array<i64: 1>}, {transform_indices = @transform_1, window_bounds = array<i64: 1>}, {transform_indices = @transform_2, window_bounds = array<i64: 16, 1024>}, {transform_indices = @transform_3, window_bounds = array<i64: 16, 1024>}]} {
    %c0 = arith.constant 0 : index
    %0 = memref.load %arg1[%c0] : memref<1xf32, #tpu.memory_space<smem>>
    %c0_0 = arith.constant 0 : index
    %1 = memref.load %arg2[%c0_0] : memref<1xf32, #tpu.memory_space<smem>>
    %c0_1 = arith.constant 0 : index
    %c0_2 = arith.constant 0 : index
    %2 = vector.load %arg3[%c0_1, %c0_2] : memref<16x1024xf32, #tpu.memory_space<vmem>>, vector<16x1024xf32>
    %3 = vector.broadcast %0 : f32 to vector<16x1024xf32>
    %4 = arith.mulf %2, %3 : vector<16x1024xf32>
    %5 = vector.broadcast %1 : f32 to vector<16x1024xf32>
    %6 = arith.addf %4, %5 : vector<16x1024xf32>
    %c0_3 = arith.constant 0 : index
    %c0_4 = arith.constant 0 : index
    %7 = vector.load %arg4[%c0_3, %c0_4] : memref<16x1024xf32, #tpu.memory_space<vmem>>, vector<16x1024xf32>
    tpu.vector_store %arg4[%c0_3, %c0_4], %6 {strides = array<i32>} : memref<16x1024xf32, #tpu.memory_space<vmem>>, vector<16x1024xf32>,
    return
  }
  func.func @transform_0(%arg0: i32) -> i32 {
    %c0_i32 = arith.constant 0 : i32
    %c0_i32_0 = arith.constant 0 : i32
    return %c0_i32 : i32
  }
  func.func @transform_1(%arg0: i32) -> i32 {
    %c0_i32 = arith.constant 0 : i32
    %c0_i32_0 = arith.constant 0 : i32
    return %c0_i32 : i32
  }
  func.func @transform_2(%arg0: i32) -> (i32, i32) {
    %c0_i32 = arith.constant 0 : i32
    %c0_i32_0 = arith.constant 0 : i32
    return %arg0, %c0_i32 : i32, i32
  }
  func.func @transform_3(%arg0: i32) -> (i32, i32) {
    %c0_i32 = arith.constant 0 : i32
    %c0_i32_0 = arith.constant 0 : i32
    return %arg0, %c0_i32 : i32, i32
  }
}

</mosaic_0001>

<bundles_post_ra>
// kernel: tpu_custom_call.1
= control target key start
LH: loop header
LB: loop body
LE: loop exit
PB: predicated region body
PF: predicated region fallthrough
CT: control target
= control target key end

     0   :  { %10 = vsyncpa [#allocation5], 0  ;;  %s224_s0 = inlined_call_operand.<no memory space> [shape: f32[1], index: 0, kind: input, shape index: {}]   ;;  %s225_s1 = inlined_call_operand.<no memory space> [shape: f32[1], index: 1, kind: input, shape index: {}]   ;;  %s226_s2 = inlined_call_operand.hbm [shape: f32[16,1024], index: 2, kind: input, shape index: {}]   ;;  %s227_s3 = inlined_call_operand.hbm [shape: f32[16,1024], index: 3, kind: output, shape index: {}]  }
   0x1   :  { %11 = vsyncpa [#allocation6], 0  ;;  %s164_s12 = smov [#allocation4]  }
   0x2   :  { %s21_s13 = sshll.u32 %s164_s12, 4  ;;  %s22_s13 = int_to_ptr.vmem [resolvable:$true] %s21_s13 }
   0x3   :  { %s128_s14 = scalar_lea.vmem %s22_s13, 2048  ;;  %p133_p1 = scmp.lt.s32.totalorder %s22_s13, %s22_s13 }
   0x4   :  { %p129_p0 = scmp.ne.s32.totalorder %s22_s13, %s128_s14  ;;  %p134_p2 = scmp.lt.s32.totalorder %s128_s14, %s128_s14 }
   0x6   :  { %p135_p3 = por %p134_p2, %p133_p1 }
   0x8   :  { %p136_p4 = pnand %p135_p3, %p129_p0 }
   0xa   :  { %139 = shalt.err (!%p136_p4)
}
   0xb   :  { %s165_s15 = smov 1024   ;;  %s166_s16 = smov 64  }
   0xc   :  { %27 = dma.hbm_to_vmem [thread:$0]  %s226_s2, 2048, %s22_s13, [#allocation5], %s165_s15, %s165_s15, %s166_s16  }
   0xd   :  { %160 = dma.done.wait [#allocation5], 2048  }
   0xe   :  { %161 = vsyncadd [#allocation5], 4294965248  ;;  %v49_v0 = vstv %s224_s0  ;;  %v33_v1 = vld [vmem:[#allocation4] sm:$0xff]  ;;  %v200_v2 = vstv %s225_s1  ;;  %v34_v3 = vld [vmem:[#allocation4 + $0x8] sm:$0xff]  ;;  %s167_s0 = smov [#allocation7]  }
   0xf   :  { %v35_v4 = vld [vmem:[#allocation4 + $0x10] sm:$0xff]  ;;  %v50_v5 = vmul.f32 %v49_v0, %v33_v1  ;;  %v51_v6 = vmul.f32 %v49_v0, %v34_v3  ;;  %v36_v8 = vld [vmem:[#allocation4 + $0x18] sm:$0xff]  ;;  %v37_v9 = vld [vmem:[#allocation4 + $0x20] sm:$0xff]  ;;  %s104_s1 = sshll.u32 %s167_s0, 4  ;;  %s105_s1 = int_to_ptr.vmem [resolvable:$true] %s104_s1 }
  0x10   :  { %v52_v7 = vmul.f32 %v49_v0, %v35_v4  ;;  %v38_v10 = vld [vmem:[#allocation4 + $0x28] sm:$0xff]  ;;  %v53_v11 = vmul.f32 %v49_v0, %v36_v8  ;;  %v54_v12 = vmul.f32 %v49_v0, %v37_v9  ;;  %v39_v14 = vld [vmem:[#allocation4 + $0x30] sm:$0xff]  ;;  %v40_v15 = vld [vmem:[#allocation4 + $0x38] sm:$0xff]  ;;  %s140_s2 = scalar_lea.vmem %s105_s1, 2048  ;;  %p145_p6 = scmp.lt.s32.totalorder %s105_s1, %s105_s1 }
  0x11   :  { %v55_v13 = vmul.f32 %v49_v0, %v38_v10  ;;  %v41_v16 = vld [vmem:[#allocation4 + $0x40] sm:$0xff]  ;;  %v67_v17 = vadd.f32 %v200_v2, %v50_v5  ;;  %v68_v18 = vadd.f32 %v200_v2, %v51_v6  ;;  %v56_v20 = vmul.f32 %v49_v0, %v39_v14  ;;  %v42_v21 = vld [vmem:[#allocation4 + $0x48] sm:$0xff]  ;;  %v43_v22 = vld [vmem:[#allocation4 + $0x50] sm:$0xff]  ;;  %p141_p5 = scmp.ne.s32.totalorder %s105_s1, %s140_s2  ;;  %p146_p7 = scmp.lt.s32.totalorder %s140_s2, %s140_s2 }
  0x12   :  { %v69_v19 = vadd.f32 %v200_v2, %v52_v7  ;;  %v44_v23 = vld [vmem:[#allocation4 + $0x58] sm:$0xff]  ;;  %v70_v24 = vadd.f32 %v200_v2, %v53_v11  ;;  %v71_v25 = vadd.f32 %v200_v2, %v54_v12  ;;  %v57_v27 = vmul.f32 %v49_v0, %v40_v15  ;;  %v45_v28 = vld [vmem:[#allocation4 + $0x60] sm:$0xff]  ;;  %v46_v29 = vld [vmem:[#allocation4 + $0x68] sm:$0xff] }
  0x13   :  { %v72_v26 = vadd.f32 %v200_v2, %v55_v13  ;;  %v47_v30 = vld [vmem:[#allocation4 + $0x70] sm:$0xff]  ;;  %83 = vst [vmem:[#allocation7] sm:$0xff] %v67_v17  ;;  %84 = vst [vmem:[#allocation7 + $0x8] sm:$0xff] %v68_v18  ;;  %v73_v31 = vadd.f32 %v200_v2, %v56_v20  ;;  %v58_v32 = vmul.f32 %v49_v0, %v41_v16  ;;  %v48_v35 = vld [vmem:[#allocation4 + $0x78] sm:$0xff]  ;;  %p147_p8 = por %p146_p7, %p145_p6 }
  0x14   :  { %85 = vst [vmem:[#allocation7 + $0x10] sm:$0xff] %v69_v19  ;;  %v59_v33 = vmul.f32 %v49_v0, %v42_v21  ;;  %v60_v34 = vmul.f32 %v49_v0, %v43_v22  ;;  %86 = vst [vmem:[#allocation7 + $0x18] sm:$0xff] %v70_v24  ;;  %v74_v36 = vadd.f32 %v200_v2, %v57_v27 }
  0x15   :  { %87 = vst [vmem:[#allocation7 + $0x20] sm:$0xff] %v71_v25  ;;  %88 = vst [vmem:[#allocation7 + $0x28] sm:$0xff] %v72_v26  ;;  %v61_v37 = vmul.f32 %v49_v0, %v44_v23  ;;  %v62_v38 = vmul.f32 %v49_v0, %v45_v28  ;;  %v63_v39 = vmul.f32 %v49_v0, %v46_v29  ;;  %p148_p9 = pnand %p147_p8, %p141_p5 }
  0x16   :  { %89 = vst [vmem:[#allocation7 + $0x30] sm:$0xff] %v73_v31  ;;  %v75_v40 = vadd.f32 %v200_v2, %v58_v32  ;;  %v76_v41 = vadd.f32 %v200_v2, %v59_v33  ;;  %v77_v42 = vadd.f32 %v200_v2, %v60_v34  ;;  %v64_v43 = vmul.f32 %v49_v0, %v47_v30 }
  0x17   :  { %90 = vst [vmem:[#allocation7 + $0x38] sm:$0xff] %v74_v36  ;;  %v78_v44 = vadd.f32 %v200_v2, %v61_v37  ;;  %v79_v45 = vadd.f32 %v200_v2, %v62_v38  ;;  %v80_v46 = vadd.f32 %v200_v2, %v63_v39  ;;  %v65_v47 = vmul.f32 %v49_v0, %v48_v35 }
  0x18   :  { %91 = vst [vmem:[#allocation7 + $0x40] sm:$0xff] %v75_v40  ;;  %92 = vst [vmem:[#allocation7 + $0x48] sm:$0xff] %v76_v41  ;;  %v81_v48 = vadd.f32 %v200_v2, %v64_v43 }
  0x19   :  { %93 = vst [vmem:[#allocation7 + $0x50] sm:$0xff] %v77_v42  ;;  %94 = vst [vmem:[#allocation7 + $0x58] sm:$0xff] %v78_v44  ;;  %v82_v49 = vadd.f32 %v200_v2, %v65_v47 }
  0x1a   :  { %95 = vst [vmem:[#allocation7 + $0x60] sm:$0xff] %v79_v45  ;;  %96 = vst [vmem:[#allocation7 + $0x68] sm:$0xff] %v80_v46 }
  0x1b   :  { %97 = vst [vmem:[#allocation7 + $0x70] sm:$0xff] %v81_v48  ;;  %98 = vst [vmem:[#allocation7 + $0x78] sm:$0xff] %v82_v49 }
  0x1c   :  { %151 = shalt.err (!%p148_p9)
}
  0x1d   :  { %110 = dma.vmem_to_hbm [thread:$0]  %s105_s1, 2048, %s227_s3, [#allocation6], %s165_s15, %s165_s15, %s166_s16  }
  0x1e   :  { %162 = dma.done.wait [#allocation6], 2048  }
  0x1f   :  { %163 = vsyncadd [#allocation6], 4294965248 }
  0x20   :  { %114 = vsyncpa [#allocation5], 1 }
  0x21   :  { %115 = vsyncpa [#allocation6], 1 }

</bundles_post_ra>
